<compile_context>
chip_gen: v7x
topology: tpu7x:2x2x1
jax: 0.10.0
libtpu: 0.0.40
codegen_flags: <defaults>
</compile_context>

<pallas_src>
import jax
import jax.numpy as jnp
from jax.experimental import pallas as pl
from jax.experimental.pallas import tpu as pltpu


# ----------------------------------------------------------------------------
# Helpers
# ----------------------------------------------------------------------------
def _round_up(n, m):
    return ((n + m - 1) // m) * m


def _pick_group(D):
    """Interleave / sub-chunk granularity along the hidden dim."""
    if D % 256 == 0:
        return 256          # matches v6e/v7x 256-wide MXU
    if D % 128 == 0:
        return 128
    return D                # hidden dim not lane-tileable: single whole block


def _chip_info():
    """(vmem_capacity_bytes, device_kind_lowercase). Safe fallbacks."""
    vmem_cap = 64 << 20     # v7x per-TC VMEM: the safe lower bound everywhere
    kind = ""
    try:
        vmem_cap = int(pltpu.get_tpu_info().vmem_capacity_bytes)
    except Exception:
        pass
    try:
        kind = jax.devices()[0].device_kind.lower()
    except Exception:
        pass
    return vmem_cap, kind


def _tm_target(kind):
    """Row tile that makes weight streaming compute-bound on each generation."""
    if "v5" in kind:
        return 256
    if "v6" in kind:
        return 512
    if "v7" in kind:
        return 384
    return 384


def _plan_tiles(M, D, x_bytes, out_bytes, w_bytes, tm_target, budget):
    """Pick (tm, tn) given the VMEM budget.

    Returns (tm, tn). tn == D  =>  weights fully resident (single-buffered).
    Accounting: weights  = 3*D*tn*w_bytes per buffer (w12 block is D x 2*tn,
    w3 block is tn x D); activations = double-buffered x tile + double-buffered
    out tile + f32 accumulator scratch.
    """
    G = _pick_group(D)

    def act(tm):
        return tm * D * (2 * x_bytes + 2 * out_bytes + 4)

    tm = max(16, min(tm_target, _round_up(M, 16)))

    # (a) Fully-resident weights (Buffered(1): each weight byte DMA'd once).
    resident = 3 * D * D * w_bytes
    if resident + act(16) <= budget:
        while resident + act(tm) > budget and tm > 16:
            tm -= 16
        return tm, D

    # (b) Stream hidden-dim weight tiles (double-buffered), largest tn first.
    if G < D:
        for tn in sorted((t for t in range(G, D, G) if D % t == 0), reverse=True):
            if 2 * 3 * D * tn * w_bytes + act(tm) <= budget:
                return tm, tn
        # (c) Even the smallest hidden tile does not fit: shrink the ROW tile
        #     (never fall back to resident double-buffered weights).
        tn = G
        while 2 * 3 * D * tn * w_bytes + act(tm) > budget and tm > 16:
            tm -= 16
        return tm, tn

    # (d) Hidden dim not 128-divisible: weights must stay whole; shrink tm and
    #     rely on vmem_limit (block index is constant -> Buffered(1) applies).
    while resident + act(tm) > budget and tm > 16:
        tm -= 16
    return tm, D


# ----------------------------------------------------------------------------
# Parameter preparation (one time, at load)
# ----------------------------------------------------------------------------
def prepare_swiglu_params(w1, w2, w3, *, compute_dtype=jnp.bfloat16):
    """One-time prep: (out,in)->(in,out) transpose, MXU dtype cast, and fusion
    of W1^T / W2^T into a single group-interleaved (D, 2D) operand so the
    kernel runs linear1+linear2 as one MXU matmul per chunk.

    Returns (w12t, w3t).
    """
    D = w1.shape[0]
    G = _pick_group(D)
    w1t = w1.T.astype(compute_dtype)
    w2t = w2.T.astype(compute_dtype)
    w3t = w3.T.astype(compute_dtype)
    # Interleave G-wide column groups: [W1 g0 | W2 g0 | W1 g1 | W2 g1 | ...]
    w12t = jnp.stack(
        [w1t.reshape(D, D // G, G), w2t.reshape(D, D // G, G)], axis=2
    ).reshape(D, 2 * D)
    return w12t, w3t


# ----------------------------------------------------------------------------
# Kernel
# ----------------------------------------------------------------------------
def _make_kernel(n_chunks, G, compute_dtype, n_k, low_precision_gate):
    def gate(a, b):
        # SiLU(b) * a.  sigmoid stays f32 (EUP); the multiplies run in bf16 on
        # v6e/v7x (halves VPU traffic) and f32 on v5e.
        s = jax.nn.sigmoid(b)
        if low_precision_gate:
            return (b.astype(compute_dtype) * s.astype(compute_dtype)) * a.astype(compute_dtype)
        return ((b * s) * a).astype(compute_dtype)

    def body(x_ref, w12_ref, w3_ref):
        x = x_ref[...].astype(compute_dtype)     # per-tile cast, free on VPU
        partial = None
        for c in range(n_chunks):                # sub-chunks: MXU of chunk c+1
            lo = c * G                           # overlaps gating of chunk c
            # Fused linear1/linear2 column chunk: [W1 chunk c | W2 chunk c]
            ab = jnp.dot(x, w12_ref[:, 2 * lo: 2 * (lo + G)],
                         preferred_element_type=jnp.float32)
            g = gate(ab[:, :G], ab[:, G:])
            # This hidden chunk's contribution to every output feature.
            p = jnp.dot(g, w3_ref[lo: lo + G, :],
                        preferred_element_type=jnp.float32)
            partial = p if partial is None else partial + p
        return partial

    if n_k == 1:
        # Weights fully resident: no cross-step accumulator needed.
        def kernel(x_ref, w12_ref, w3_ref, o_ref):
            o_ref[...] = body(x_ref, w12_ref, w3_ref).astype(o_ref.dtype)
    else:
        def kernel(x_ref, w12_ref, w3_ref, o_ref, acc_ref):
            k = pl.program_id(1)

            @pl.when(k == 0)
            def _init():
                acc_ref[...] = jnp.zeros_like(acc_ref)

            acc_ref[...] += body(x_ref, w12_ref, w3_ref)

            @pl.when(k == pl.num_programs(1) - 1)
            def _store():
                o_ref[...] = acc_ref[...].astype(o_ref.dtype)

    return kernel


# ----------------------------------------------------------------------------
# Wrapper
# ----------------------------------------------------------------------------
def swiglu_pallas(x, w12t, w3t, *, out_dtype=None, tm=None,
                  vmem_budget_bytes=None):
    """x: (..., D); (w12t, w3t) from prepare_swiglu_params (bf16, pre-fused)."""
    orig_shape = x.shape
    D = orig_shape[-1]
    assert w3t.shape == (D, D) and w12t.shape == (D, 2 * D)

    compute_dtype = w12t.dtype
    out_dtype = out_dtype or x.dtype
    w_bytes = jnp.dtype(compute_dtype).itemsize
    x_bytes = jnp.dtype(x.dtype).itemsize
    out_bytes = jnp.dtype(out_dtype).itemsize

    vmem_cap, kind = _chip_info()
    if vmem_budget_bytes is None:
        # ~96 MiB on 128 MiB parts (v5e/v6e), ~44 MiB on v7x (64 MiB per TC).
        vmem_budget_bytes = max(24 << 20,
                                min(vmem_cap - (20 << 20), (vmem_cap * 3) // 4))

    tm_target = tm or _tm_target(kind)
    x2 = x.reshape(-1, D)
    M = x2.shape[0]

    # v7x has 2 TensorCores: at small M split rows so grid_m >= 2.
    if "v7" in kind and M > 16:
        tm_target = min(tm_target, max(16, _round_up(-(-M // 2), 16)))

    G = _pick_group(D)
    tm_eff, tn = _plan_tiles(M, D, x_bytes, out_bytes, w_bytes,
                             tm_target, vmem_budget_bytes)
    nk = D // tn
    n_chunks = tn // G

    # Zero-pad rows so any batch*seq works (SiLU(0)*0 = 0, sliced off below).
    m_pad = _round_up(M, tm_eff)
    if m_pad != M:
        x2 = jnp.pad(x2, ((0, m_pad - M), (0, 0)))
    grid_m = m_pad // tm_eff

    w_bufs = 1 if nk == 1 else 2
    vmem_need = (w_bufs * 3 * D * tn * w_bytes
                 + 2 * tm_eff * D * x_bytes
                 + 2 * tm_eff * D * out_bytes
                 + (tm_eff * D * 4 if nk > 1 else 0))
    # Clamp to what the chip physically has (v7x: <= 56 MiB), keep headroom.
    vmem_limit = int(min(max(vmem_need + (8 << 20), 32 << 20),
                         vmem_cap - (8 << 20)))

    kernel = _make_kernel(n_chunks, G, compute_dtype, nk,
                          low_precision_gate=("v5" not in kind))

    def _build(single_buffer_weights):
        spec_kwargs = dict(pipeline_mode=pl.Buffered(1)) if single_buffer_weights else {}
        in_specs = [
            pl.BlockSpec((tm_eff, D), lambda i, k: (i, 0)),              # x rows
            pl.BlockSpec((D, 2 * tn), lambda i, k: (0, k), **spec_kwargs),  # W1|W2
            pl.BlockSpec((tn, D), lambda i, k: (k, 0), **spec_kwargs),      # W3^T
        ]
        scratch = [] if nk == 1 else [pltpu.VMEM((tm_eff, D), jnp.float32)]
        return pl.pallas_call(
            kernel,
            out_shape=jax.ShapeDtypeStruct((m_pad, D), out_dtype),
            grid_spec=pltpu.PrefetchScalarGridSpec(
                num_scalar_prefetch=0,
                grid=(grid_m, nk),                      # reduction axis last
                in_specs=in_specs,
                out_specs=pl.BlockSpec((tm_eff, D), lambda i, k: (i, 0)),
                scratch_shapes=scratch,
            ),
            compiler_params=pltpu.CompilerParams(
                dimension_semantics=("parallel", "arbitrary"),
                vmem_limit_bytes=vmem_limit),
        )

    try:
        out = _build(single_buffer_weights=(nk == 1))(x2, w12t, w3t)
    except Exception:
        if nk != 1:
            raise
        # Robustness fallback if pl.Buffered(1) is rejected on this jax build.
        out = _build(single_buffer_weights=False)(x2, w12t, w3t)

    return out[:M].reshape(orig_shape[:-1] + (D,)).astype(out_dtype)


# ----------------------------------------------------------------------------
# Reference + demo
# ----------------------------------------------------------------------------
def swiglu_reference(x, w1, w2, w3):
    a = x @ w1.T
    b = x @ w2.T
    return (jax.nn.silu(b) * a) @ w3.T


if __name__ == "__main__":
    key = jax.random.PRNGKey(0)
    batch, seq, D = 2, 8, 128            # intermediate_size = 128

    kx, k1, k2, k3 = jax.random.split(key, 4)
    x = jax.random.normal(kx, (batch, seq, D), dtype=jnp.float32)
    # Deterministic synthetic weights, PyTorch (out, in) convention, scaled
    # like nn.Linear default init (~U(-1/sqrt(in), 1/sqrt(in))).
    bound = 1.0 / jnp.sqrt(D)
    w1 = jax.random.uniform(k1, (D, D), jnp.float32, -bound, bound)
    w2 = jax.random.uniform(k2, (D, D), jnp.float32, -bound, bound)
    w3 = jax.random.uniform(k3, (D, D), jnp.float32, -bound, bound)

    # One-time parameter prep (transpose + bf16 cast + W1/W2 fusion), hoisted
    # out of the call path.
    w12t, w3t = prepare_swiglu_params(w1, w2, w3)

    out = swiglu_pallas(x, w12t, w3t)
    out = jax.block_until_ready(out)

    ref = swiglu_reference(x, w1, w2, w3)
    assert out.shape == x.shape
    assert out.dtype == x.dtype
    max_err = float(jnp.max(jnp.abs(out - ref)))
    # bf16 MXU inputs with f32 accumulation: small, expected precision loss.
    assert jnp.allclose(out, ref, atol=2e-2, rtol=2e-2), (
        f"mismatch vs reference, max_err={max_err}")

    print("KERNEL_OK")
</pallas_src>

<mosaic_0001>
module attributes {stable_mosaic.version = 11 : i64} {
  func.func @kernel(%arg0: i32, %arg1: i32, %arg2: memref<16x128xf32, #tpu.memory_space<vmem>>, %arg3: memref<128x256xbf16, #tpu.memory_space<vmem>>, %arg4: memref<128x128xbf16, #tpu.memory_space<vmem>>, %arg5: memref<16x128xf32, #tpu.memory_space<vmem>>) attributes {dimension_semantics = [#tpu.dimension_semantics<parallel>, #tpu.dimension_semantics<arbitrary>], iteration_bounds = array<i64: 1, 1>, scalar_prefetch = 0 : i64, scratch_operands = 0 : i64, tpu.core_type = #tpu.core_type<tc>, window_params = [{transform_indices = @transform_0, window_bounds = array<i64: 16, 128>}, {pipeline_mode = #tpu.pipeline_mode<synchronous>, transform_indices = @transform_1, window_bounds = array<i64: 128, 256>}, {pipeline_mode = #tpu.pipeline_mode<synchronous>, transform_indices = @transform_2, window_bounds = array<i64: 128, 128>}, {transform_indices = @transform_3, window_bounds = array<i64: 16, 128>}]} {
    %c0 = arith.constant 0 : index
    %c0_0 = arith.constant 0 : index
    %0 = vector.load %arg2[%c0, %c0_0] : memref<16x128xf32, #tpu.memory_space<vmem>>, vector<16x128xf32>
    %1 = arith.truncf %0 : vector<16x128xf32> to vector<16x128xbf16>
    %c0_1 = arith.constant 0 : index
    %c0_2 = arith.constant 0 : index
    %2 = vector.load %arg3[%c0_1, %c0_2] : memref<128x256xbf16, #tpu.memory_space<vmem>>, vector<128x256xbf16>
    %cst = arith.constant dense<0.000000e+00> : vector<16x256xf32>
    %3 = tpu.matmul %1, %2, %cst {dimension_numbers = #tpu.dot_dimension_numbers<[1], [0], [0], [1], [0, 0, 1, 1], [], []>} : vector<16x128xbf16>, vector<128x256xbf16>, vector<16x256xf32> -> vector<16x256xf32>
    %4 = vector.extract_strided_slice %3 {offsets = [0, 0], sizes = [16, 128], strides = [1, 1]} : vector<16x256xf32> to vector<16x128xf32>
    %5 = vector.extract_strided_slice %3 {offsets = [0, 128], sizes = [16, 128], strides = [1, 1]} : vector<16x256xf32> to vector<16x128xf32>
    %6 = arith.negf %5 : vector<16x128xf32>
    %7 = math.exp %6 : vector<16x128xf32>
    %cst_3 = arith.constant 1.000000e+00 : f32
    %8 = vector.broadcast %cst_3 : f32 to vector<16x128xf32>
    %9 = arith.addf %8, %7 : vector<16x128xf32>
    %10 = arith.divf %8, %9 : vector<16x128xf32>
    %11 = arith.truncf %5 : vector<16x128xf32> to vector<16x128xbf16>
    %12 = arith.truncf %10 : vector<16x128xf32> to vector<16x128xbf16>
    %13 = arith.mulf %11, %12 : vector<16x128xbf16>
    %14 = arith.truncf %4 : vector<16x128xf32> to vector<16x128xbf16>
    %15 = arith.mulf %13, %14 : vector<16x128xbf16>
    %c0_4 = arith.constant 0 : index
    %c0_5 = arith.constant 0 : index
    %16 = vector.load %arg4[%c0_4, %c0_5] : memref<128x128xbf16, #tpu.memory_space<vmem>>, vector<128x128xbf16>
    %cst_6 = arith.constant dense<0.000000e+00> : vector<16x128xf32>
    %17 = tpu.matmul %15, %16, %cst_6 {dimension_numbers = #tpu.dot_dimension_numbers<[1], [0], [0], [1], [0, 0, 1, 1], [], []>} : vector<16x128xbf16>, vector<128x128xbf16>, vector<16x128xf32> -> vector<16x128xf32>
    %c0_7 = arith.constant 0 : index
    %c0_8 = arith.constant 0 : index
    %18 = vector.load %arg5[%c0_7, %c0_8] : memref<16x128xf32, #tpu.memory_space<vmem>>, vector<16x128xf32>
    tpu.vector_store %arg5[%c0_7, %c0_8], %17 {strides = array<i32>} : memref<16x128xf32, #tpu.memory_space<vmem>>, vector<16x128xf32>,
    return
  }
  func.func @transform_0(%arg0: i32, %arg1: i32) -> (i32, i32) {
    %c0_i32 = arith.constant 0 : i32
    %c0_i32_0 = arith.constant 0 : i32
    return %arg0, %c0_i32 : i32, i32
  }
  func.func @transform_1(%arg0: i32, %arg1: i32) -> (i32, i32) {
    %c0_i32 = arith.constant 0 : i32
    %c0_i32_0 = arith.constant 0 : i32
    return %c0_i32, %arg1 : i32, i32
  }
  func.func @transform_2(%arg0: i32, %arg1: i32) -> (i32, i32) {
    %c0_i32 = arith.constant 0 : i32
    %c0_i32_0 = arith.constant 0 : i32
    return %arg1, %c0_i32 : i32, i32
  }
  func.func @transform_3(%arg0: i32, %arg1: i32) -> (i32, i32) {
    %c0_i32 = arith.constant 0 : i32
    %c0_i32_0 = arith.constant 0 : i32
    return %arg0, %c0_i32 : i32, i32
  }
}

module attributes {stable_mosaic.version = 11 : i64} {
  func.func @kernel(%arg0: i32, %arg1: i32, %arg2: memref<16x128xf32, #tpu.memory_space<vmem>>, %arg3: memref<128x256xbf16, #tpu.memory_space<vmem>>, %arg4: memref<128x128xbf16, #tpu.memory_space<vmem>>, %arg5: memref<16x128xf32, #tpu.memory_space<vmem>>) attributes {dimension_semantics = [#tpu.dimension_semantics<parallel>, #tpu.dimension_semantics<arbitrary>], iteration_bounds = array<i64: 1, 1>, scalar_prefetch = 0 : i64, scratch_operands = 0 : i64, tpu.core_type = #tpu.core_type<tc>, window_params = [{transform_indices = @transform_0, window_bounds = array<i64: 16, 128>}, {transform_indices = @transform_1, window_bounds = array<i64: 128, 256>}, {transform_indices = @transform_2, window_bounds = array<i64: 128, 128>}, {transform_indices = @transform_3, window_bounds = array<i64: 16, 128>}]} {
    %c0 = arith.constant 0 : index
    %c0_0 = arith.constant 0 : index
    %0 = vector.load %arg2[%c0, %c0_0] : memref<16x128xf32, #tpu.memory_space<vmem>>, vector<16x128xf32>
    %1 = arith.truncf %0 : vector<16x128xf32> to vector<16x128xbf16>
    %c0_1 = arith.constant 0 : index
    %c0_2 = arith.constant 0 : index
    %2 = vector.load %arg3[%c0_1, %c0_2] : memref<128x256xbf16, #tpu.memory_space<vmem>>, vector<128x256xbf16>
    %cst = arith.constant dense<0.000000e+00> : vector<16x256xf32>
    %3 = tpu.matmul %1, %2, %cst {dimension_numbers = #tpu.dot_dimension_numbers<[1], [0], [0], [1], [0, 0, 1, 1], [], []>} : vector<16x128xbf16>, vector<128x256xbf16>, vector<16x256xf32> -> vector<16x256xf32>
    %4 = vector.extract_strided_slice %3 {offsets = [0, 0], sizes = [16, 128], strides = [1, 1]} : vector<16x256xf32> to vector<16x128xf32>
    %5 = vector.extract_strided_slice %3 {offsets = [0, 128], sizes = [16, 128], strides = [1, 1]} : vector<16x256xf32> to vector<16x128xf32>
    %6 = arith.negf %5 : vector<16x128xf32>
    %7 = math.exp %6 : vector<16x128xf32>
    %cst_3 = arith.constant 1.000000e+00 : f32
    %8 = vector.broadcast %cst_3 : f32 to vector<16x128xf32>
    %9 = arith.addf %8, %7 : vector<16x128xf32>
    %10 = arith.divf %8, %9 : vector<16x128xf32>
    %11 = arith.truncf %5 : vector<16x128xf32> to vector<16x128xbf16>
    %12 = arith.truncf %10 : vector<16x128xf32> to vector<16x128xbf16>
    %13 = arith.mulf %11, %12 : vector<16x128xbf16>
    %14 = arith.truncf %4 : vector<16x128xf32> to vector<16x128xbf16>
    %15 = arith.mulf %13, %14 : vector<16x128xbf16>
    %c0_4 = arith.constant 0 : index
    %c0_5 = arith.constant 0 : index
    %16 = vector.load %arg4[%c0_4, %c0_5] : memref<128x128xbf16, #tpu.memory_space<vmem>>, vector<128x128xbf16>
    %cst_6 = arith.constant dense<0.000000e+00> : vector<16x128xf32>
    %17 = tpu.matmul %15, %16, %cst_6 {dimension_numbers = #tpu.dot_dimension_numbers<[1], [0], [0], [1], [0, 0, 1, 1], [], []>} : vector<16x128xbf16>, vector<128x128xbf16>, vector<16x128xf32> -> vector<16x128xf32>
    %c0_7 = arith.constant 0 : index
    %c0_8 = arith.constant 0 : index
    %18 = vector.load %arg5[%c0_7, %c0_8] : memref<16x128xf32, #tpu.memory_space<vmem>>, vector<16x128xf32>
    tpu.vector_store %arg5[%c0_7, %c0_8], %17 {strides = array<i32>} : memref<16x128xf32, #tpu.memory_space<vmem>>, vector<16x128xf32>,
    return
  }
  func.func @transform_0(%arg0: i32, %arg1: i32) -> (i32, i32) {
    %c0_i32 = arith.constant 0 : i32
    %c0_i32_0 = arith.constant 0 : i32
    return %arg0, %c0_i32 : i32, i32
  }
  func.func @transform_1(%arg0: i32, %arg1: i32) -> (i32, i32) {
    %c0_i32 = arith.constant 0 : i32
    %c0_i32_0 = arith.constant 0 : i32
    return %c0_i32, %arg1 : i32, i32
  }
  func.func @transform_2(%arg0: i32, %arg1: i32) -> (i32, i32) {
    %c0_i32 = arith.constant 0 : i32
    %c0_i32_0 = arith.constant 0 : i32
    return %arg1, %c0_i32 : i32, i32
  }
  func.func @transform_3(%arg0: i32, %arg1: i32) -> (i32, i32) {
    %c0_i32 = arith.constant 0 : i32
    %c0_i32_0 = arith.constant 0 : i32
    return %arg0, %c0_i32 : i32, i32
  }
}

</mosaic_0001>

<bundles_post_ra>
// kernel: tpu_custom_call.1
= control target key start
LH: loop header
LB: loop body
LE: loop exit
PB: predicated region body
PF: predicated region fallthrough
CT: control target
= control target key end

     0   :  { %8 = vsyncpa [#allocation3], 0  ;;  %s636_s0 = inlined_call_operand.hbm [shape: f32[16,128], index: 0, kind: input, shape index: {}]   ;;  %s637_s1 = inlined_call_operand.hbm [shape: bf16[128,256], index: 1, kind: input, shape index: {}]   ;;  %s638_s2 = inlined_call_operand.hbm [shape: bf16[128,128], index: 2, kind: input, shape index: {}]   ;;  %s639_s3 = inlined_call_operand.hbm [shape: f32[16,128], index: 3, kind: output, shape index: {}]  }
   0x1   :  { %9 = vsyncpa [#allocation6], 0 }
   0x2   :  { %10 = vsyncpa [#allocation4], 0  ;;  %s541_s12 = smov [#allocation5]   ;;  %s542_s14 = smov [#allocation2]  }
   0x3   :  { %s28_s13 = sshll.u32 %s541_s12, 4  ;;  %s16_s15 = sshll.u32 %s542_s14, 4  ;;  %s29_s13 = int_to_ptr.vmem [resolvable:$true] %s28_s13  ;;  %s572_s15 = int_to_ptr.vmem [resolvable:$true] %s16_s15 }
   0x4   :  { %s447_s18 = scalar_lea.hbm %s637_s1, 2048 }
   0x5   :  { %p448_p0 = scmp.ne.s32.totalorder %s637_s1, %s447_s18  ;;  %p451_p1 = scmp.lt.u32.totalorder %s447_s18, %s637_s1 }
   0x7   :  { %p453_p2 = pnand %p451_p1, %p448_p0 }
   0x9   :  { %456 = shalt.err (!%p453_p2)
}
   0xa   :  { %s457_s23 = scalar_lea.vmem %s29_s13, 2048  ;;  %p462_p4 = scmp.lt.s32.totalorder %s29_s13, %s29_s13 }
   0xb   :  { %p458_p3 = scmp.ne.s32.totalorder %s29_s13, %s457_s23  ;;  %p463_p5 = scmp.lt.s32.totalorder %s457_s23, %s457_s23 }
   0xd   :  { %p464_p6 = por %p463_p5, %p462_p4 }
   0xf   :  { %p465_p7 = pnand %p464_p6, %p458_p3 }
  0x11   :  { %468 = shalt.err (!%p465_p7)
}
  0x12   :  { %s543_s24 = smov 128   ;;  %s544_s25 = smov 8  }
  0x13   :  { %34 = dma.hbm_to_vmem [thread:$0]  %s637_s1, 2048, %s29_s13, [#allocation6], %s543_s24, %s543_s24, %s544_s25  }
  0x14   :  { %s469_s30 = scalar_lea.hbm %s636_s0, 256 }
  0x15   :  { %p470_p8 = scmp.ne.s32.totalorder %s636_s0, %s469_s30  ;;  %p473_p9 = scmp.lt.u32.totalorder %s469_s30, %s636_s0 }
  0x17   :  { %p475_p10 = pnand %p473_p9, %p470_p8 }
  0x19   :  { %478 = shalt.err (!%p475_p10)
}
  0x1a   :  { %s479_s8 = scalar_lea.vmem %s572_s15, 256  ;;  %p484_p12 = scmp.lt.s32.totalorder %s572_s15, %s572_s15 }
  0x1b   :  { %p480_p11 = scmp.ne.s32.totalorder %s572_s15, %s479_s8  ;;  %p485_p13 = scmp.lt.s32.totalorder %s479_s8, %s479_s8 }
  0x1d   :  { %p486_p0 = por %p485_p13, %p484_p12 }
  0x1f   :  { %p487_p1 = pnand %p486_p0, %p480_p11 }
  0x21   :  { %490 = shalt.err (!%p487_p1)
}
  0x22   :  { %22 = dma.hbm_to_vmem [thread:$0]  %s636_s0, 256, %s572_s15, [#allocation3], %s543_s24, %s543_s24, %s544_s25  }
  0x23   :  { %s545_s10 = smov [#allocation7]   ;;  %s491_s14 = scalar_lea.hbm %s638_s2, 1024 }
  0x24   :  { %s40_s11 = sshll.u32 %s545_s10, 4  ;;  %p492_p2 = scmp.ne.s32.totalorder %s638_s2, %s491_s14  ;;  %s41_s11 = int_to_ptr.vmem [resolvable:$true] %s40_s11 }
  0x25   :  { %p495_p3 = scmp.lt.u32.totalorder %s491_s14, %s638_s2 }
  0x27   :  { %p497_p4 = pnand %p495_p3, %p492_p2 }
  0x29   :  { %500 = shalt.err (!%p497_p4)
}
  0x2a   :  { %s501_s20 = scalar_lea.vmem %s41_s11, 1024  ;;  %p506_p6 = scmp.lt.s32.totalorder %s41_s11, %s41_s11 }
  0x2b   :  { %p502_p5 = scmp.ne.s32.totalorder %s41_s11, %s501_s20  ;;  %p507_p7 = scmp.lt.s32.totalorder %s501_s20, %s501_s20 }
  0x2d   :  { %p508_p8 = por %p507_p7, %p506_p6 }
  0x2f   :  { %p509_p9 = pnand %p508_p8, %p502_p5 }
  0x31   :  { %512 = shalt.err (!%p509_p9)
}
  0x32   :  { %s546_s0 = smov 64   ;;  %s547_s15 = smov 4  }
  0x33   :  { %46 = dma.hbm_to_vmem [thread:$0]  %s638_s2, 1024, %s41_s11, [#allocation6], %s546_s0, %s546_s0, %s547_s15  }
  0x34   :  { %535 = dma.done.wait [#allocation3], 256  }
  0x35   :  { %536 = vsyncadd [#allocation3], 4294967040 }
  0x36   :  { %537 = dma.done.wait [#allocation6], 3072  }
  0x37   :  { %538 = vsyncadd [#allocation6], 4294964224  ;;  %v548_v0 = vmov 0   ;;  %v407_v1 = vld [vmem:[#allocation5 + $0x4] ss:$8 sps:$4 sm:$0xff]   ;;  %v57_v17 = vld [vmem:[#allocation2] sm:$0xff] }
  0x38   :  { %188 = vmatprep.mubr.bf16.mxu0 %v548_v0  ;;  %v409_v2 = vld [vmem:[#allocation5] ss:$8 sps:$4 sm:$0xff]   ;;  %156 = vmatprep.subr.bf16.mxu0 %v407_v1  ;;  %v410_v3 = vld [vmem:[#allocation5 + $0x14] ss:$8 sps:$4 sm:$0xff]   ;;  %v412_v4 = vld [vmem:[#allocation5 + $0x10] ss:$8 sps:$4 sm:$0xff]  }
  0x39   :  { %157 = vmatpush1.bf16.msra.mxu0 %v409_v2  ;;  %v413_v5 = vld [vmem:[#allocation5 + $0x24] ss:$8 sps:$4 sm:$0xff]   ;;  %v415_v6 = vld [vmem:[#allocation5 + $0x20] ss:$8 sps:$4 sm:$0xff]   ;;  %v416_v7 = vld [vmem:[#allocation5 + $0x34] ss:$8 sps:$4 sm:$0xff]  }
  0x3a   :  { %158 = vmatprep.subr.bf16.mxu0 %v410_v3  ;;  %v418_v8 = vld [vmem:[#allocation5 + $0x30] ss:$8 sps:$4 sm:$0xff]   ;;  %v419_v9 = vld [vmem:[#allocation5 + $0x44] ss:$8 sps:$4 sm:$0xff]   ;;  %v421_v10 = vld [vmem:[#allocation5 + $0x40] ss:$8 sps:$4 sm:$0xff]  }
  0x3b   :  { %v422_v11 = vld [vmem:[#allocation5 + $0x54] ss:$8 sps:$4 sm:$0xff]   ;;  %v424_v12 = vld [vmem:[#allocation5 + $0x50] ss:$8 sps:$4 sm:$0xff]   ;;  %v425_v13 = vld [vmem:[#allocation5 + $0x64] ss:$8 sps:$4 sm:$0xff]  }
  0x3c   :  { %v427_v14 = vld [vmem:[#allocation5 + $0x60] ss:$8 sps:$4 sm:$0xff]   ;;  %v428_v15 = vld [vmem:[#allocation5 + $0x74] ss:$8 sps:$4 sm:$0xff]   ;;  %v430_v16 = vld [vmem:[#allocation5 + $0x70] ss:$8 sps:$4 sm:$0xff]  }
  0x3d   :  { %159 = vmatpush1.bf16.msra.mxu0 %v412_v4  ;;  %v58_v18 = vld [vmem:[#allocation2 + $0x8] sm:$0xff]  ;;  %v431_v20 = vld [vmem:[#allocation7] sm:$0xff]   ;;  %v549_v21 = vmov 0.0   ;;  %v432_v22 = vld [vmem:[#allocation7 + $0x8] sm:$0xff]   ;;  %vm550_vm0 = vmmov 0   ;;  %s551_s2 = smov [#allocation8]  }
  0x3e   :  { %160 = vmatprep.subr.bf16.mxu0 %v413_v5  ;;  %v59_v19 = vpack.c.bf16 %v58_v18, %v57_v17  ;;  %376 = vmatprep.subr.bf16.mxu1 %v549_v21  ;;  %v433_v23 = vld [vmem:[#allocation7 + $0x10] sm:$0xff]   ;;  %v434_v24 = vld [vmem:[#allocation7 + $0x18] sm:$0xff]   ;;  %v435_v25 = vld [vmem:[#allocation7 + $0x20] sm:$0xff]   ;;  %s328_s23 = sshll.u32 %s551_s2, 4  ;;  %s329_s23 = int_to_ptr.vmem [resolvable:$true] %s328_s23 }
  0x3f   :  { %377 = vmatpush3.bf16.msra.mxu1 %v431_v20  ;;  %v436_v26 = vld [vmem:[#allocation7 + $0x28] sm:$0xff]   ;;  %v437_v27 = vld [vmem:[#allocation7 + $0x30] sm:$0xff]   ;;  %v438_v28 = vld [vmem:[#allocation7 + $0x38] sm:$0xff]   ;;  %392 = vmatprep.mubr.msk.bf16.mxu1 %vm550_vm0, %v549_v21  ;;  %s513_s26 = scalar_lea.vmem %s329_s23, 256  ;;  %p518_p11 = scmp.lt.s32.totalorder %s329_s23, %s329_s23 }
  0x40   :  { %378 = vmatprep.subr.bf16.mxu1 %v549_v21  ;;  %p514_p10 = scmp.ne.s32.totalorder %s329_s23, %s513_s26  ;;  %p519_p12 = scmp.lt.s32.totalorder %s513_s26, %s513_s26 }
  0x41   :  { %161 = vmatpush1.bf16.msra.mxu0 %v415_v6 }
  0x42   :  { %162 = vmatprep.subr.bf16.mxu0 %v416_v7  ;;  %p520_p13 = por %p519_p12, %p518_p11 }
  0x43   :  { %379 = vmatpush3.bf16.msra.mxu1 %v432_v22 }
  0x44   :  { %380 = vmatprep.subr.bf16.mxu1 %v549_v21  ;;  %p521_p0 = pnand %p520_p13, %p514_p10 }
  0x45   :  { %163 = vmatpush1.bf16.msra.mxu0 %v418_v8 }
  0x46   :  { %164 = vmatprep.subr.bf16.mxu0 %v419_v9 }
  0x47   :  { %381 = vmatpush3.bf16.msra.mxu1 %v433_v23 }
  0x48   :  { %382 = vmatprep.subr.bf16.mxu1 %v549_v21 }
  0x49   :  { %165 = vmatpush1.bf16.msra.mxu0 %v421_v10 }
  0x4a   :  { %166 = vmatprep.subr.bf16.mxu0 %v422_v11 }
  0x4b   :  { %383 = vmatpush3.bf16.msra.mxu1 %v434_v24 }
  0x4c   :  { %384 = vmatprep.subr.bf16.mxu1 %v549_v21 }
  0x4d   :  { %167 = vmatpush1.bf16.msra.mxu0 %v424_v12 }
  0x4e   :  { %168 = vmatprep.subr.bf16.mxu0 %v425_v13 }
  0x4f   :  { %385 = vmatpush3.bf16.msra.mxu1 %v435_v25 }
  0x50   :  { %386 = vmatprep.subr.bf16.mxu1 %v549_v21 }
  0x51   :  { %169 = vmatpush1.bf16.msra.mxu0 %v427_v14 }
  0x52   :  { %170 = vmatprep.subr.bf16.mxu0 %v428_v15 }
  0x53   :  { %387 = vmatpush3.bf16.msra.mxu1 %v436_v26 }
  0x54   :  { %388 = vmatprep.subr.bf16.mxu1 %v549_v21 }
  0x55   :  { %171 = vmatpush1.bf16.msra.mxu0 %v430_v16 }
  0x57   :  { %389 = vmatpush3.bf16.msra.mxu1 %v437_v27 }
  0x58   :  { %189 = vmatmul.mubr.bf16.vlgmr.msra.gmra.mrb[0].mxu0 %v59_v19  ;;  %390 = vmatprep.subr.bf16.mxu1 %v549_v21 }
  0x5b   :  { %391 = vmatpush3.bf16.msra.mxu1 %v438_v28 }
 0x12b   :  { %v190_v29 = vpop.f32.mrb[0].mxu0 }
 0x12c   :  { %v192_v30 = vpop.f32.mrb[1].mxu0 }
 0x12d   :  { %v357_v31 = vmul.f32 -1.442695, %v192_v30  ;;  %v194_v32 = vpop.f32.mrb[2].mxu0 }
 0x12e   :  { %v214_v33 = vpack.c.bf16 %v194_v32, %v190_v29  ;;  %v196_v34 = vpop.f32.mrb[3].mxu0 }
 0x12f   :  { %439 = vpow2.f32 %v357_v31  ;;  %v358_v35 = vmul.f32 -1.442695, %v196_v34  ;;  %v211_v36 = vpack.c.bf16 %v196_v34, %v192_v30 }
 0x131   :  { %441 = vpow2.f32 %v358_v35 }
 0x139   :  { %v440_v37 = vpop.eup %439 }
 0x13a   :  { %v205_v38 = vadd.f32 1.0, %v440_v37 }
 0x13b   :  { %v442_v39 = vpop.eup %441 }
 0x13c   :  { %v206_v40 = vadd.f32 1.0, %v442_v39  ;;  %443 = vrcp.f32 %v205_v38 }
 0x13e   :  { %445 = vrcp.f32 %v206_v40 }
 0x146   :  { %v444_v41 = vpop.eup %443 }
 0x148   :  { %v446_v42 = vpop.eup %445 }
 0x149   :  { %v212_v43 = vpack.c.bf16 %v446_v42, %v444_v41 }
 0x14b   :  { %v213_v44 = vmul.bf16 %v212_v43, %v211_v36 }
 0x14d   :  { %v215_v45 = vmul.bf16 %v214_v33, %v213_v44 }
 0x14f   :  { %393 = vmatmul.mubr.bf16.vlgmr.msra.gmra.mrb[0].mxu1 %v215_v45 }
 0x222   :  { %v314_v46 = vpop.f32.mrb[0].mxu1 }
 0x223   :  { %321 = vst [vmem:[#allocation8] sm:$0xff] %v314_v46  ;;  %v394_v47 = vpop.f32.mrb[1].mxu1 }
 0x224   :  { %v317_v48 = vpop.f32.mrb[2].mxu1 }
 0x225   :  { %322 = vst [vmem:[#allocation8 + $0x8] sm:$0xff] %v317_v48  ;;  %v395_v49 = vpop.f32.mrb[3].mxu1 }
 0x226   :  { %524 = shalt.err (!%p521_p0)
}
 0x227   :  { %s525_s29 = scalar_lea.hbm %s639_s3, 256 }
 0x228   :  { %p526_p1 = scmp.ne.s32.totalorder %s639_s3, %s525_s29  ;;  %p529_p2 = scmp.lt.u32.totalorder %s525_s29, %s639_s3 }
 0x22a   :  { %p531_p3 = pnand %p529_p2, %p526_p1 }
 0x22c   :  { %534 = shalt.err (!%p531_p3)
}
 0x22d   :  { %334 = dma.vmem_to_hbm [thread:$0]  %s329_s23, 256, %s639_s3, [#allocation4], %s543_s24, %s543_s24, %s544_s25  }
 0x22e   :  { %539 = dma.done.wait [#allocation4], 256  }
 0x22f   :  { %540 = vsyncadd [#allocation4], 4294967040 }
 0x230   :  { %338 = vsyncpa [#allocation3], 1 }
 0x231   :  { %339 = vsyncpa [#allocation6], 1 }
 0x232   :  { %340 = vsyncpa [#allocation4], 1 }

// kernel: tpu_custom_call.1
= control target key start
LH: loop header
LB: loop body
LE: loop exit
PB: predicated region body
PF: predicated region fallthrough
CT: control target
= control target key end

     0   :  { %8 = vsyncpa [#allocation3], 0  ;;  %s636_s0 = inlined_call_operand.hbm [shape: f32[16,128], index: 0, kind: input, shape index: {}]   ;;  %s637_s1 = inlined_call_operand.hbm [shape: bf16[128,256], index: 1, kind: input, shape index: {}]   ;;  %s638_s2 = inlined_call_operand.hbm [shape: bf16[128,128], index: 2, kind: input, shape index: {}]   ;;  %s639_s3 = inlined_call_operand.hbm [shape: f32[16,128], index: 3, kind: output, shape index: {}]  }
   0x1   :  { %9 = vsyncpa [#allocation6], 0 }
   0x2   :  { %10 = vsyncpa [#allocation4], 0  ;;  %s541_s12 = smov [#allocation5]   ;;  %s542_s14 = smov [#allocation2]  }
   0x3   :  { %s28_s13 = sshll.u32 %s541_s12, 4  ;;  %s16_s15 = sshll.u32 %s542_s14, 4  ;;  %s29_s13 = int_to_ptr.vmem [resolvable:$true] %s28_s13  ;;  %s572_s15 = int_to_ptr.vmem [resolvable:$true] %s16_s15 }
   0x4   :  { %s447_s18 = scalar_lea.hbm %s637_s1, 2048 }
   0x5   :  { %p448_p0 = scmp.ne.s32.totalorder %s637_s1, %s447_s18  ;;  %p451_p1 = scmp.lt.u32.totalorder %s447_s18, %s637_s1 }
   0x7   :  { %p453_p2 = pnand %p451_p1, %p448_p0 }
   0x9   :  { %456 = shalt.err (!%p453_p2)
}
   0xa   :  { %s457_s23 = scalar_lea.vmem %s29_s13, 2048  ;;  %p462_p4 = scmp.lt.s32.totalorder %s29_s13, %s29_s13 }
   0xb   :  { %p458_p3 = scmp.ne.s32.totalorder %s29_s13, %s457_s23  ;;  %p463_p5 = scmp.lt.s32.totalorder %s457_s23, %s457_s23 }
   0xd   :  { %p464_p6 = por %p463_p5, %p462_p4 }
   0xf   :  { %p465_p7 = pnand %p464_p6, %p458_p3 }
  0x11   :  { %468 = shalt.err (!%p465_p7)
}
  0x12   :  { %s543_s24 = smov 128   ;;  %s544_s25 = smov 8  }
  0x13   :  { %34 = dma.hbm_to_vmem [thread:$0]  %s637_s1, 2048, %s29_s13, [#allocation6], %s543_s24, %s543_s24, %s544_s25  }
  0x14   :  { %s469_s30 = scalar_lea.hbm %s636_s0, 256 }
  0x15   :  { %p470_p8 = scmp.ne.s32.totalorder %s636_s0, %s469_s30  ;;  %p473_p9 = scmp.lt.u32.totalorder %s469_s30, %s636_s0 }
  0x17   :  { %p475_p10 = pnand %p473_p9, %p470_p8 }
  0x19   :  { %478 = shalt.err (!%p475_p10)
}
  0x1a   :  { %s479_s8 = scalar_lea.vmem %s572_s15, 256  ;;  %p484_p12 = scmp.lt.s32.totalorder %s572_s15, %s572_s15 }
  0x1b   :  { %p480_p11 = scmp.ne.s32.totalorder %s572_s15, %s479_s8  ;;  %p485_p13 = scmp.lt.s32.totalorder %s479_s8, %s479_s8 }
  0x1d   :  { %p486_p0 = por %p485_p13, %p484_p12 }
  0x1f   :  { %p487_p1 = pnand %p486_p0, %p480_p11 }
  0x21   :  { %490 = shalt.err (!%p487_p1)
}
  0x22   :  { %22 = dma.hbm_to_vmem [thread:$0]  %s636_s0, 256, %s572_s15, [#allocation3], %s543_s24, %s543_s24, %s544_s25  }
  0x23   :  { %s545_s10 = smov [#allocation7]   ;;  %s491_s14 = scalar_lea.hbm %s638_s2, 1024 }
  0x24   :  { %s40_s11 = sshll.u32 %s545_s10, 4  ;;  %p492_p2 = scmp.ne.s32.totalorder %s638_s2, %s491_s14  ;;  %s41_s11 = int_to_ptr.vmem [resolvable:$true] %s40_s11 }
  0x25   :  { %p495_p3 = scmp.lt.u32.totalorder %s491_s14, %s638_s2 }
  0x27   :  { %p497_p4 = pnand %p495_p3, %p492_p2 }
  0x29   :  { %500 = shalt.err (!%p497_p4)
}
  0x2a   :  { %s501_s20 = scalar_lea.vmem %s41_s11, 1024  ;;  %p506_p6 = scmp.lt.s32.totalorder %s41_s11, %s41_s11 }
  0x2b   :  { %p502_p5 = scmp.ne.s32.totalorder %s41_s11, %s501_s20  ;;  %p507_p7 = scmp.lt.s32.totalorder %s501_s20, %s501_s20 }
  0x2d   :  { %p508_p8 = por %p507_p7, %p506_p6 }
  0x2f   :  { %p509_p9 = pnand %p508_p8, %p502_p5 }
  0x31   :  { %512 = shalt.err (!%p509_p9)
}
  0x32   :  { %s546_s0 = smov 64   ;;  %s547_s15 = smov 4  }
  0x33   :  { %46 = dma.hbm_to_vmem [thread:$0]  %s638_s2, 1024, %s41_s11, [#allocation6], %s546_s0, %s546_s0, %s547_s15  }
  0x34   :  { %535 = dma.done.wait [#allocation3], 256  }
  0x35   :  { %536 = vsyncadd [#allocation3], 4294967040 }
  0x36   :  { %537 = dma.done.wait [#allocation6], 3072  }
  0x37   :  { %538 = vsyncadd [#allocation6], 4294964224  ;;  %v548_v0 = vmov 0   ;;  %v407_v1 = vld [vmem:[#allocation5 + $0x4] ss:$8 sps:$4 sm:$0xff]   ;;  %v57_v17 = vld [vmem:[#allocation2] sm:$0xff] }
  0x38   :  { %188 = vmatprep.mubr.bf16.mxu0 %v548_v0  ;;  %v409_v2 = vld [vmem:[#allocation5] ss:$8 sps:$4 sm:$0xff]   ;;  %156 = vmatprep.subr.bf16.mxu0 %v407_v1  ;;  %v410_v3 = vld [vmem:[#allocation5 + $0x14] ss:$8 sps:$4 sm:$0xff]   ;;  %v412_v4 = vld [vmem:[#allocation5 + $0x10] ss:$8 sps:$4 sm:$0xff]  }
  0x39   :  { %157 = vmatpush1.bf16.msra.mxu0 %v409_v2  ;;  %v413_v5 = vld [vmem:[#allocation5 + $0x24] ss:$8 sps:$4 sm:$0xff]   ;;  %v415_v6 = vld [vmem:[#allocation5 + $0x20] ss:$8 sps:$4 sm:$0xff]   ;;  %v416_v7 = vld [vmem:[#allocation5 + $0x34] ss:$8 sps:$4 sm:$0xff]  }
  0x3a   :  { %158 = vmatprep.subr.bf16.mxu0 %v410_v3  ;;  %v418_v8 = vld [vmem:[#allocation5 + $0x30] ss:$8 sps:$4 sm:$0xff]   ;;  %v419_v9 = vld [vmem:[#allocation5 + $0x44] ss:$8 sps:$4 sm:$0xff]   ;;  %v421_v10 = vld [vmem:[#allocation5 + $0x40] ss:$8 sps:$4 sm:$0xff]  }
  0x3b   :  { %v422_v11 = vld [vmem:[#allocation5 + $0x54] ss:$8 sps:$4 sm:$0xff]   ;;  %v424_v12 = vld [vmem:[#allocation5 + $0x50] ss:$8 sps:$4 sm:$0xff]   ;;  %v425_v13 = vld [vmem:[#allocation5 + $0x64] ss:$8 sps:$4 sm:$0xff]  }
  0x3c   :  { %v427_v14 = vld [vmem:[#allocation5 + $0x60] ss:$8 sps:$4 sm:$0xff]   ;;  %v428_v15 = vld [vmem:[#allocation5 + $0x74] ss:$8 sps:$4 sm:$0xff]   ;;  %v430_v16 = vld [vmem:[#allocation5 + $0x70] ss:$8 sps:$4 sm:$0xff]  }
  0x3d   :  { %159 = vmatpush1.bf16.msra.mxu0 %v412_v4  ;;  %v58_v18 = vld [vmem:[#allocation2 + $0x8] sm:$0xff]  ;;  %v431_v20 = vld [vmem:[#allocation7] sm:$0xff]   ;;  %v549_v21 = vmov 0.0   ;;  %v432_v22 = vld [vmem:[#allocation7 + $0x8] sm:$0xff]   ;;  %vm550_vm0 = vmmov 0   ;;  %s551_s2 = smov [#allocation8]  }
  0x3e   :  { %160 = vmatprep.subr.bf16.mxu0 %v413_v5  ;;  %v59_v19 = vpack.c.bf16 %v58_v18, %v57_v17  ;;  %376 = vmatprep.subr.bf16.mxu1 %v549_v21  ;;  %v433_v23 = vld [vmem:[#allocation7 + $0x10] sm:$0xff]   ;;  %v434_v24 = vld [vmem:[#allocation7 + $0x18] sm:$0xff]   ;;  %v435_v25 = vld [vmem:[#allocation7 + $0x20] sm:$0xff]   ;;  %s328_s23 = sshll.u32 %s551_s2, 4  ;;  %s329_s23 = int_to_ptr.vmem [resolvable:$true] %s328_s23 }
  0x3f   :  { %377 = vmatpush3.bf16.msra.mxu1 %v431_v20  ;;  %v436_v26 = vld [vmem:[#allocation7 + $0x28] sm:$0xff]   ;;  %v437_v27 = vld [vmem:[#allocation7 + $0x30] sm:$0xff]   ;;  %v438_v28 = vld [vmem:[#allocation7 + $0x38] sm:$0xff]   ;;  %392 = vmatprep.mubr.msk.bf16.mxu1 %vm550_vm0, %v549_v21  ;;  %s513_s26 = scalar_lea.vmem %s329_s23, 256  ;;  %p518_p11 = scmp.lt.s32.totalorder %s329_s23, %s329_s23 }
  0x40   :  { %378 = vmatprep.subr.bf16.mxu1 %v549_v21  ;;  %p514_p10 = scmp.ne.s32.totalorder %s329_s23, %s513_s26  ;;  %p519_p12 = scmp.lt.s32.totalorder %s513_s26, %s513_s26 }
  0x41   :  { %161 = vmatpush1.bf16.msra.mxu0 %v415_v6 }
  0x42   :  { %162 = vmatprep.subr.bf16.mxu0 %v416_v7  ;;  %p520_p13 = por %p519_p12, %p518_p11 }
  0x43   :  { %379 = vmatpush3.bf16.msra.mxu1 %v432_v22 }
  0x44   :  { %380 = vmatprep.subr.bf16.mxu1 %v549_v21  ;;  %p521_p0 = pnand %p520_p13, %p514_p10 }
  0x45   :  { %163 = vmatpush1.bf16.msra.mxu0 %v418_v8 }
  0x46   :  { %164 = vmatprep.subr.bf16.mxu0 %v419_v9 }
  0x47   :  { %381 = vmatpush3.bf16.msra.mxu1 %v433_v23 }
  0x48   :  { %382 = vmatprep.subr.bf16.mxu1 %v549_v21 }
  0x49   :  { %165 = vmatpush1.bf16.msra.mxu0 %v421_v10 }
  0x4a   :  { %166 = vmatprep.subr.bf16.mxu0 %v422_v11 }
  0x4b   :  { %383 = vmatpush3.bf16.msra.mxu1 %v434_v24 }
  0x4c   :  { %384 = vmatprep.subr.bf16.mxu1 %v549_v21 }
  0x4d   :  { %167 = vmatpush1.bf16.msra.mxu0 %v424_v12 }
  0x4e   :  { %168 = vmatprep.subr.bf16.mxu0 %v425_v13 }
  0x4f   :  { %385 = vmatpush3.bf16.msra.mxu1 %v435_v25 }
  0x50   :  { %386 = vmatprep.subr.bf16.mxu1 %v549_v21 }
  0x51   :  { %169 = vmatpush1.bf16.msra.mxu0 %v427_v14 }
  0x52   :  { %170 = vmatprep.subr.bf16.mxu0 %v428_v15 }
  0x53   :  { %387 = vmatpush3.bf16.msra.mxu1 %v436_v26 }
  0x54   :  { %388 = vmatprep.subr.bf16.mxu1 %v549_v21 }
  0x55   :  { %171 = vmatpush1.bf16.msra.mxu0 %v430_v16 }
  0x57   :  { %389 = vmatpush3.bf16.msra.mxu1 %v437_v27 }
  0x58   :  { %189 = vmatmul.mubr.bf16.vlgmr.msra.gmra.mrb[0].mxu0 %v59_v19  ;;  %390 = vmatprep.subr.bf16.mxu1 %v549_v21 }
  0x5b   :  { %391 = vmatpush3.bf16.msra.mxu1 %v438_v28 }
 0x12b   :  { %v190_v29 = vpop.f32.mrb[0].mxu0 }
 0x12c   :  { %v192_v30 = vpop.f32.mrb[1].mxu0 }
 0x12d   :  { %v357_v31 = vmul.f32 -1.442695, %v192_v30  ;;  %v194_v32 = vpop.f32.mrb[2].mxu0 }
 0x12e   :  { %v214_v33 = vpack.c.bf16 %v194_v32, %v190_v29  ;;  %v196_v34 = vpop.f32.mrb[3].mxu0 }
 0x12f   :  { %439 = vpow2.f32 %v357_v31  ;;  %v358_v35 = vmul.f32 -1.442695, %v196_v34  ;;  %v211_v36 = vpack.c.bf16 %v196_v34, %v192_v30 }
 0x131   :  { %441 = vpow2.f32 %v358_v35 }
 0x139   :  { %v440_v37 = vpop.eup %439 }
 0x13a   :  { %v205_v38 = vadd.f32 1.0, %v440_v37 }
 0x13b   :  { %v442_v39 = vpop.eup %441 }
 0x13c   :  { %v206_v40 = vadd.f32 1.0, %v442_v39  ;;  %443 = vrcp.f32 %v205_v38 }
 0x13e   :  { %445 = vrcp.f32 %v206_v40 }
 0x146   :  { %v444_v41 = vpop.eup %443 }
 0x148   :  { %v446_v42 = vpop.eup %445 }
 0x149   :  { %v212_v43 = vpack.c.bf16 %v446_v42, %v444_v41 }
 0x14b   :  { %v213_v44 = vmul.bf16 %v212_v43, %v211_v36 }
 0x14d   :  { %v215_v45 = vmul.bf16 %v214_v33, %v213_v44 }
 0x14f   :  { %393 = vmatmul.mubr.bf16.vlgmr.msra.gmra.mrb[0].mxu1 %v215_v45 }
 0x222   :  { %v314_v46 = vpop.f32.mrb[0].mxu1 }
 0x223   :  { %321 = vst [vmem:[#allocation8] sm:$0xff] %v314_v46  ;;  %v394_v47 = vpop.f32.mrb[1].mxu1 }
 0x224   :  { %v317_v48 = vpop.f32.mrb[2].mxu1 }
 0x225   :  { %322 = vst [vmem:[#allocation8 + $0x8] sm:$0xff] %v317_v48  ;;  %v395_v49 = vpop.f32.mrb[3].mxu1 }
 0x226   :  { %524 = shalt.err (!%p521_p0)
}
 0x227   :  { %s525_s29 = scalar_lea.hbm %s639_s3, 256 }
 0x228   :  { %p526_p1 = scmp.ne.s32.totalorder %s639_s3, %s525_s29  ;;  %p529_p2 = scmp.lt.u32.totalorder %s525_s29, %s639_s3 }
 0x22a   :  { %p531_p3 = pnand %p529_p2, %p526_p1 }
 0x22c   :  { %534 = shalt.err (!%p531_p3)
}
 0x22d   :  { %334 = dma.vmem_to_hbm [thread:$0]  %s329_s23, 256, %s639_s3, [#allocation4], %s543_s24, %s543_s24, %s544_s25  }
 0x22e   :  { %539 = dma.done.wait [#allocation4], 256  }
 0x22f   :  { %540 = vsyncadd [#allocation4], 4294967040 }
 0x230   :  { %338 = vsyncpa [#allocation3], 1 }
 0x231   :  { %339 = vsyncpa [#allocation6], 1 }
 0x232   :  { %340 = vsyncpa [#allocation4], 1 }

</bundles_post_ra>
